<compile_context>
chip_gen: v5e
topology: v5e:2x2
jax: 0.10.0
libtpu: 0.0.40
codegen_flags: <defaults>
</compile_context>

<pallas_src>
import math
import numpy as np
import jax
import jax.numpy as jnp
from jax.experimental import pallas as pl
from jax.experimental.pallas import tpu as pltpu

LANE = 128
SUBLANE = 8


def calculate_same_padding_1d(n_frames: int, filter_size: int, stride: int):
    """TF-style 'same' padding: output length = ceil(n_frames / stride)."""
    total = max((math.ceil(n_frames / stride) - 1) * stride + filter_size - n_frames, 0)
    pad_l = total // 2
    return pad_l, total - pad_l


def _round_up(a: int, b: int) -> int:
    return (a + b - 1) // b * b


def pulse_downsample(x, filter_size: int, stride: int, padding="same"):
    B, R, nbins, n_frames = x.shape
    if padding == "same":
        pad_l, pad_r = calculate_same_padding_1d(n_frames, filter_size, stride)
    else:
        pad_l = pad_r = int(padding)

    out_width = (n_frames + (pad_l + pad_r) - (filter_size - 1) - 1) // stride + 1
    if out_width <= 0:
        return jnp.zeros((B, R, nbins, max(out_width, 0)), dtype=x.dtype)

    idx = stride * np.arange(out_width) + filter_size // 2 - pad_l
    valid = (idx >= 0) & (idx < n_frames)
    n_valid = int(valid.sum())
    M = B * R * nbins
    if n_valid == 0 or M == 0:
        return jnp.zeros((B, R, nbins, out_width), dtype=x.dtype)

    j_lo = int(np.argmax(valid))   # first valid output column (valid range is contiguous)
    row0 = int(idx[j_lo])          # its in-range source frame

    # ---- wrapper-side decimation: one strided slice in native layout -------
    # Reads the input once (bursty), writes only the ~n_frames/stride frames
    # the kernel actually needs.  No transpose anywhere.
    x2 = x.reshape(M, n_frames)
    stop = row0 + (n_valid - 1) * stride + 1          # == idx[j_lo + n_valid - 1] + 1 <= n_frames
    x_dec = jax.lax.slice(x2, (0, row0), (M, stop), (1, stride))   # (M, n_valid)

    # ---- tile selection (generation-aware VMEM budget) ----------------------
    itemsize = np.dtype(x.dtype).itemsize
    # Per-row VMEM bytes for the (lane-padded) input + output blocks.
    row_bytes = (_round_up(n_valid, LANE) + _round_up(out_width, LANE)) * itemsize

    try:
        vmem_cap = int(pltpu.get_tpu_info().vmem_capacity_bytes)
    except Exception:
        vmem_cap = 64 << 20                       # conservative: v7x per-TensorCore VMEM
    budget = min(48 << 20, int(0.4 * vmem_cap))   # double-buffered in+out working set

    if M <= SUBLANE:
        TM = M                                    # single block == full extent (always legal)
    else:
        TM = max(SUBLANE, (budget // (2 * row_bytes)) // SUBLANE * SUBLANE)
        # >= 4 grid steps (2 per v7x TensorCore) when M is big enough so the
        # pipeline overlaps DMA with compute/stores on both cores.
        if M >= 4 * SUBLANE:
            TM = min(TM, _round_up(pl.cdiv(M, 4), SUBLANE))
        if TM >= M:
            TM = M
    # TODO(synk): for extremely wide out_width (in+out block pair > VMEM even at
    # TM=8) a second grid axis over output-column blocks would be needed.

    n_blk_rows = _round_up(TM, SUBLANE)
    need = 2 * n_blk_rows * row_bytes + (4 << 20)
    vmem_limit = int(min(int(0.75 * vmem_cap), max(32 << 20, need)))

    # ---- kernel: place decimated frames, zero-fill static padding columns ---
    def kernel(x_ref, o_ref):
        g = x_ref[...]                                     # (TM, n_valid)
        if n_valid == out_width:
            o_ref[...] = g                                 # pure lane-dense copy
        else:
            rows = o_ref.shape[0]
            if j_lo > 0:                                   # left zero pad (lane offset 0)
                o_ref[:, pl.ds(0, j_lo)] = jnp.zeros((rows, j_lo), o_ref.dtype)
            tail_start = j_lo + n_valid
            if tail_start < out_width:                     # right zero pad, lane-aligned start
                a = (tail_start // LANE) * LANE
                o_ref[:, pl.ds(a, out_width - a)] = jnp.zeros(
                    (rows, out_width - a), o_ref.dtype)
            o_ref[:, pl.ds(j_lo, n_valid)] = g             # valid region (overwrites <=1 tile)

    out2 = pl.pallas_call(
        kernel,
        out_shape=jax.ShapeDtypeStruct((M, out_width), x.dtype),
        grid=(pl.cdiv(M, TM),),
        in_specs=[pl.BlockSpec((TM, n_valid), lambda m: (m, 0))],
        out_specs=pl.BlockSpec((TM, out_width), lambda m: (m, 0)),
        compiler_params=pltpu.CompilerParams(
            dimension_semantics=("parallel",),
            vmem_limit_bytes=vmem_limit,
        ),
    )(x_dec)

    return out2.reshape(B, R, nbins, out_width)


def _reference(x, filter_size, stride, padding="same"):
    """Pure numpy reference mirroring the torch module."""
    n_frames = x.shape[-1]
    if padding == "same":
        pad_l, pad_r = calculate_same_padding_1d(n_frames, filter_size, stride)
    else:
        pad_l = pad_r = int(padding)
    out_width = (n_frames + (pad_l + pad_r) - (filter_size - 1) - 1) // stride + 1
    idx = stride * np.arange(out_width) + filter_size // 2 - pad_l
    valid = (idx >= 0) & (idx < n_frames)
    gathered = np.asarray(x)[..., np.clip(idx, 0, n_frames - 1)]
    return np.where(valid[(None,) * (x.ndim - 1) + (slice(None),)], gathered, 0.0)


if __name__ == "__main__":
    key = jax.random.PRNGKey(0)

    # Config 1: exercises the zero-padding path ('same' padding, stride=3).
    B, R, nbins, n_frames = 2, 4, 16, 16
    filter_size, stride = 2, 3
    x = jax.random.normal(key, (B, R, nbins, n_frames), dtype=jnp.float32)
    out = jax.block_until_ready(pulse_downsample(x, filter_size, stride, padding="same"))
    ref = _reference(x, filter_size, stride, padding="same").astype(np.float32)
    assert out.shape == ref.shape, (out.shape, ref.shape)
    assert np.array_equal(np.asarray(out), ref)

    # Config 2: exercises the no-padding pure-copy path with stride-2 decimation.
    x2 = jax.random.normal(jax.random.PRNGKey(1), (1, 2, 8, 64), dtype=jnp.float32)
    out2 = jax.block_until_ready(pulse_downsample(x2, 4, 2, padding="same"))
    ref2 = _reference(x2, 4, 2, padding="same").astype(np.float32)
    assert out2.shape == ref2.shape, (out2.shape, ref2.shape)
    assert np.array_equal(np.asarray(out2), ref2)

    print("KERNEL_OK")
</pallas_src>

<mosaic_0001>
module attributes {stable_mosaic.version = 11 : i64} {
  func.func @kernel(%arg0: i32, %arg1: memref<32x5xf32, #tpu.memory_space<vmem>>, %arg2: memref<32x6xf32, #tpu.memory_space<vmem>>) attributes {dimension_semantics = [#tpu.dimension_semantics<parallel>], iteration_bounds = array<i64: 4>, scalar_prefetch = 0 : i64, scratch_operands = 0 : i64, tpu.core_type = #tpu.core_type<tc>, window_params = [{transform_indices = @transform_0, window_bounds = array<i64: 32, 5>}, {transform_indices = @transform_1, window_bounds = array<i64: 32, 6>}]} {
    %c0 = arith.constant 0 : index
    %c0_0 = arith.constant 0 : index
    %0 = vector.load %arg1[%c0, %c0_0] : memref<32x5xf32, #tpu.memory_space<vmem>>, vector<32x5xf32>
    %cst = arith.constant 0.000000e+00 : f32
    %1 = vector.broadcast %cst : f32 to vector<32x6xf32>
    %c0_1 = arith.constant 0 : index
    %c0_2 = arith.constant 0 : index
    %2 = vector.load %arg2[%c0_1, %c0_2] : memref<32x6xf32, #tpu.memory_space<vmem>>, vector<32x6xf32>
    tpu.vector_store %arg2[%c0_1, %c0_2], %1 {strides = array<i32>} : memref<32x6xf32, #tpu.memory_space<vmem>>, vector<32x6xf32>,
    %c0_3 = arith.constant 0 : index
    %c0_4 = arith.constant 0 : index
    %3 = vector.load %arg2[%c0_3, %c0_4] : memref<32x6xf32, #tpu.memory_space<vmem>>, vector<32x5xf32>
    tpu.vector_store %arg2[%c0_3, %c0_4], %0 {strides = array<i32>} : memref<32x6xf32, #tpu.memory_space<vmem>>, vector<32x5xf32>,
    return
  }
  func.func @transform_0(%arg0: i32) -> (i32, i32) {
    %c0_i32 = arith.constant 0 : i32
    %c0_i32_0 = arith.constant 0 : i32
    return %arg0, %c0_i32 : i32, i32
  }
  func.func @transform_1(%arg0: i32) -> (i32, i32) {
    %c0_i32 = arith.constant 0 : i32
    %c0_i32_0 = arith.constant 0 : i32
    return %arg0, %c0_i32 : i32, i32
  }
}

</mosaic_0001>

<bundles_post_ra>
// kernel: tpu_custom_call.1
= control target key start
LH: loop header
LB: loop body
LE: loop exit
PB: predicated region body
PF: predicated region fallthrough
CT: control target
= control target key end

     0   :  { %s229_s6 = smov 0   ;;  %s246_s0 = inlined_call_operand.vmem [shape: f32[128,5], index: 0, kind: input, shape index: {}]   ;;  %s247_s1 = inlined_call_operand.vmem [shape: f32[128,6], index: 1, kind: output, shape index: {}]  }
   0x1 LB: > { %s190_s7 = sadd.s32 4294967295, %s216_s6   ;;  %p194_p0 = scmp.ge.s32.totalorder %s216_s6, 1  ;;  %s216_s6 = sphi %s229_s6, %s11_s6  }
   0x2   : > { %p88_p1 = scmp.lt.s32.totalorder %s216_s6, 5 }
   0x4   : > { %p89_p2 = pnand %p194_p0, %p88_p1 }
   0x5   : > { %s195_s8 = sshll.u32 (!%p89_p2), %s190_s7, 2 }
   0x6   : > { %92 = sbr.rel (%p89_p2) target bundleno = 22 (0x16), region = 24  ;;  %p109_p3 = scmp.lt.s32.totalorder (!%p89_p2), %s195_s8, 15 }
   0xb   : > { %s249_s8 = smov (!%p109_p3, %s195_s8), 15  ;;  %vm124_vm0 = vcmask 48128   ;;  %v218_v0 = vmov 0.0   ;;  %vm129_vm1 = vcmask 39936  }
   0xc   : > { %s196_s9 = sshll.u32 %s249_s8, 3 }
   0xd   : > { %s118_s12 = scalar_lea.vmem %s247_s1, %s196_s9  ;;  %s112_s15 = scalar_lea.vmem %s246_s0, %s196_s9 }
   0xe   : > { %125 = vst.msk [vmem:[%s118_s12] sm:$0xff] %vm124_vm0, %v218_v0  ;;  %v120_v1 = vld [vmem:[%s112_s15] sm:$0xff]  ;;  %v121_v2 = vld [vmem:[%s112_s15 + $0x8] sm:$0xff]  ;;  %v122_v3 = vld [vmem:[%s112_s15 + $0x10] sm:$0xff] }
   0xf   : > { %126 = vst.msk [vmem:[%s118_s12 + $0x8] sm:$0xff] %vm124_vm0, %v218_v0  ;;  %v123_v4 = vld [vmem:[%s112_s15 + $0x18] sm:$0xff] }
  0x10   : > { %127 = vst.msk [vmem:[%s118_s12 + $0x10] sm:$0xff] %vm124_vm0, %v218_v0 }
  0x11   : > { %128 = vst.msk [vmem:[%s118_s12 + $0x18] sm:$0xff] %vm124_vm0, %v218_v0 }
  0x12   : > { %130 = vst.msk [vmem:[%s118_s12] sm:$0xff] %vm129_vm1, %v120_v1 }
  0x13   : > { %131 = vst.msk [vmem:[%s118_s12 + $0x8] sm:$0xff] %vm129_vm1, %v121_v2 }
  0x14   : > { %132 = vst.msk [vmem:[%s118_s12 + $0x10] sm:$0xff] %vm129_vm1, %v122_v3 }
  0x15   : > { %133 = vst.msk [vmem:[%s118_s12 + $0x18] sm:$0xff] %vm129_vm1, %v123_v4 }
  0x16 PF: > { %s11_s6 = sadd.s32 1, %s216_s6  }
  0x17   : > { %p8_p4 = scmp.ge.s32.totalorder %s11_s6, 6  }
  0x19   :  { %10 = sbr.rel (!%p8_p4) target bundleno = 1 (0x1), region = 54 }

</bundles_post_ra>
